<compile_context>
chip_gen: v7x
topology: tpu7x:2x2x1
jax: 0.10.0
libtpu: 0.0.40
codegen_flags: <defaults>
</compile_context>

<pallas_src>
import functools

import jax
import jax.numpy as jnp
import numpy as np
from jax import lax
from jax.experimental import pallas as pl
from jax.experimental.pallas import tpu as pltpu

# Module hyper-params (match nn.Module __init__ defaults)
IN_CHANNELS = 12
NUM_INIT_FEATURES = 32
KS = (3, 5, 7)
KMAX = max(KS)                 # 7
MAX_PAD = (KMAX - 1) // 2      # 3


def _round_up(x, m):
    return ((x + m - 1) // m) * m


def _inception_kernel(x_ref, w_ref, o_ref, col_ref):
    """One batch block per grid step, NCL layout, single MXU matmul.

    x_ref  : (bb, C_in, L)            input block (no L padding), compute dtype
    w_ref  : (C_out_tot, KMAX*C_GRP)  fused 2-D weight; bias folded into column C_in
    o_ref  : (bb, C_out_tot, L)       fused post-ReLU output (= concat of 3 branches)
    col_ref: (KMAX*C_GRP, bb*L)       VMEM im2col scratch: row k*C_GRP + c, column b*L + l
                                      holds x[b, c, l + k - MAX_PAD] (0 outside); row C_in
                                      of tap group 0 is the constant-ones bias row; all
                                      other pad rows are 0.
    """
    bb, c_in, L = x_ref.shape
    c_grp = col_ref.shape[0] // KMAX
    cols = col_ref.shape[1]
    cdt = col_ref.dtype
    n_pad_rows = c_grp - c_in

    # ---- pad rows of each (sublane-aligned) tap group: zeros, except the bias row ----
    pad_iota = lax.broadcasted_iota(jnp.int32, (n_pad_rows, cols), 0)
    bias_pad_block = (pad_iota == 0).astype(cdt)          # ones row then zeros
    zero_pad_block = jnp.zeros((n_pad_rows, cols), cdt)
    for k in range(KMAX):
        r0 = k * c_grp
        col_ref[r0 + c_in:r0 + c_grp, :] = bias_pad_block if k == 0 else zero_pad_block

    # ---- data rows: one shifted copy of x per (batch, tap) ---------------------------
    for b in range(bb):
        x_b = x_ref[b]                                    # (C_in, L)
        c0 = b * L
        for k in range(KMAX):
            shift = MAX_PAD - k                           # +3 .. -3 ; dst_l = src_l + shift
            r0 = k * c_grp
            if shift > 0:
                col_ref[r0:r0 + c_in, c0:c0 + shift] = jnp.zeros((c_in, shift), cdt)
                col_ref[r0:r0 + c_in, c0 + shift:c0 + L] = x_b[:, :L - shift]
            elif shift < 0:
                s = -shift
                col_ref[r0:r0 + c_in, c0:c0 + L - s] = x_b[:, s:]
                col_ref[r0:r0 + c_in, c0 + L - s:c0 + L] = jnp.zeros((c_in, s), cdt)
            else:
                col_ref[r0:r0 + c_in, c0:c0 + L] = x_b

    # ---- one (C_out_tot, K) @ (K, bb*L) MXU matmul, f32 accumulate, then ReLU --------
    acc = jnp.dot(w_ref[...], col_ref[...], preferred_element_type=jnp.float32)
    acc = jnp.maximum(acc, 0.0)                           # bias already folded into matmul

    for b in range(bb):
        o_ref[b] = acc[:, b * L:(b + 1) * L].astype(o_ref.dtype)


def _fuse_branch_params(w_list, b_list, c_grp, dtype):
    """Fuse the 3 branches into one 2-D (3*C_out, KMAX*c_grp) weight.

    w_list[j]: (ks_j, C_in, C_out) tap-major; b_list[j]: (C_out,).
    Column k*c_grp + c multiplies x[:, c, l + k - MAX_PAD]; column C_in (tap 0, first pad
    row) multiplies the constant-ones row of the im2col (bias fold).  Zero-padded taps /
    channels contribute exactly 0, so numerics equal the three separate convs.
    """
    c_in = w_list[0].shape[1]
    c_out = w_list[0].shape[2]
    c_out_tot = len(w_list) * c_out
    w2d = jnp.zeros((c_out_tot, KMAX * c_grp), jnp.float32)
    for j, (w, ks) in enumerate(zip(w_list, KS)):
        off = (KMAX - ks) // 2                            # center alignment
        for t in range(ks):
            k = off + t
            w2d = w2d.at[j * c_out:(j + 1) * c_out,
                         k * c_grp:k * c_grp + c_in].set(jnp.transpose(w[t]))
    bias = jnp.concatenate(b_list).astype(jnp.float32)
    w2d = w2d.at[:, c_in].set(bias)                       # bias column -> ones row
    return w2d.astype(dtype)


@functools.partial(jax.jit, static_argnames=("batch_block", "use_bf16", "out_dtype"))
def inception_forward(x_ncl, w1, b1, w2, b2, w3, b3, *,
                      batch_block=8, use_bf16=False, out_dtype=None):
    """x_ncl: (N, C_in, L) float (PyTorch Conv1d layout). Returns (N, 3*C_out, L)."""
    N, c_in, L = x_ncl.shape
    assert L >= KMAX, "sequence length must be >= the largest kernel size"
    compute_dtype = jnp.bfloat16 if use_bf16 else jnp.float32
    out_dt = jnp.dtype(out_dtype) if out_dtype is not None else x_ncl.dtype

    c_grp = _round_up(c_in + 1, 8)                        # +1 row reserved for bias fold
    k_pad = KMAX * c_grp
    w2d = _fuse_branch_params([w1, w2, w3], [b1, b2, b3], c_grp, compute_dtype)
    c_out_tot = w2d.shape[0]

    # Batch block: keep >=2 grid steps when N > 1 so both v7x TensorCores get work.
    bb = max(1, min(batch_block, (N + 1) // 2)) if N > 1 else 1
    n_blocks = pl.cdiv(N, bb)
    n_padded = n_blocks * bb

    x_in = x_ncl.astype(compute_dtype)
    if n_padded != N:      # pad batch so the grid divides evenly; sliced off below
        x_in = jnp.pad(x_in, ((0, n_padded - N), (0, 0), (0, 0)))

    # TODO(synk): for very long L, add an L-tile grid axis (3-column halo copies into the
    # im2col scratch) so double-buffered blocks stay inside v7x's 64 MiB VMEM budget.
    out = pl.pallas_call(
        _inception_kernel,
        out_shape=jax.ShapeDtypeStruct((n_padded, c_out_tot, L), out_dt),
        grid=(n_blocks,),
        in_specs=[
            pl.BlockSpec((bb, c_in, L), lambda n: (n, 0, 0)),
            pl.BlockSpec((c_out_tot, k_pad), lambda n: (0, 0)),
        ],
        out_specs=pl.BlockSpec((bb, c_out_tot, L), lambda n: (n, 0, 0)),
        scratch_shapes=[pltpu.VMEM((k_pad, bb * L), compute_dtype)],
        compiler_params=pltpu.CompilerParams(
            dimension_semantics=("parallel",),
            vmem_limit_bytes=64 * 1024 * 1024,
        ),
    )(x_in, w2d)

    return out[:N] if n_padded != N else out


def _init_branch_params(key, c_in, c_out, ks):
    """Deterministic PyTorch-like uniform init. Returns (w, b) with
    w: (ks, c_in, c_out)  (transposed from PyTorch's (c_out, c_in, ks))."""
    kw, kb = jax.random.split(key)
    fan_in = c_in * ks
    bound = 1.0 / np.sqrt(fan_in)
    w_torch = jax.random.uniform(kw, (c_out, c_in, ks), jnp.float32, -bound, bound)
    b = jax.random.uniform(kb, (c_out,), jnp.float32, -bound, bound)
    w = jnp.transpose(w_torch, (2, 1, 0))  # (ks, c_in, c_out)
    return w, b


def _reference_forward(x_ncl, w1, b1, w2, b2, w3, b3):
    """Pure-JAX reference using lax conv (NCL layout), for correctness check."""
    def conv_branch(w, b, ks):
        w_oiw = jnp.transpose(w, (2, 1, 0))          # (c_out, c_in, ks)
        pad = (ks - 1) // 2
        y = lax.conv_general_dilated(
            x_ncl, w_oiw, window_strides=(1,), padding=[(pad, pad)],
            dimension_numbers=("NCH", "OIH", "NCH"))
        return jnp.maximum(y + b[None, :, None], 0.0)
    return jnp.concatenate(
        [conv_branch(w1, b1, KS[0]), conv_branch(w2, b2, KS[1]), conv_branch(w3, b3, KS[2])],
        axis=1)


if __name__ == "__main__":
    key = jax.random.PRNGKey(0)
    kx, k1, k2, k3 = jax.random.split(key, 4)

    N, L = 2, 16
    x = jax.random.normal(kx, (N, IN_CHANNELS, L), jnp.float32)

    w1, b1 = _init_branch_params(k1, IN_CHANNELS, NUM_INIT_FEATURES, KS[0])
    w2, b2 = _init_branch_params(k2, IN_CHANNELS, NUM_INIT_FEATURES, KS[1])
    w3, b3 = _init_branch_params(k3, IN_CHANNELS, NUM_INIT_FEATURES, KS[2])

    ref = _reference_forward(x, w1, b1, w2, b2, w3, b3)

    # Exact f32 path.
    out = inception_forward(x, w1, b1, w2, b2, w3, b3)
    jax.block_until_ready(out)
    np.testing.assert_allclose(np.asarray(out), np.asarray(ref), rtol=1e-5, atol=1e-5)
    assert out.shape == (N, 3 * NUM_INIT_FEATURES, L)

    # bf16-streaming path (f32 accumulate inside the kernel) with loose tolerance.
    out_bf16 = inception_forward(x, w1, b1, w2, b2, w3, b3, use_bf16=True)
    jax.block_until_ready(out_bf16)
    np.testing.assert_allclose(np.asarray(out_bf16), np.asarray(ref), rtol=5e-2, atol=5e-2)

    print("KERNEL_OK")
</pallas_src>

<mosaic_0001>
module attributes {stable_mosaic.version = 11 : i64} {
  func.func @_inception_kernel(%arg0: i32, %arg1: memref<1x12x16xf32, #tpu.memory_space<vmem>>, %arg2: memref<96x112xf32, #tpu.memory_space<vmem>>, %arg3: memref<1x96x16xf32, #tpu.memory_space<vmem>>, %arg4: memref<112x16xf32, #tpu.memory_space<vmem>>) attributes {dimension_semantics = [#tpu.dimension_semantics<parallel>], iteration_bounds = array<i64: 2>, scalar_prefetch = 0 : i64, scratch_operands = 1 : i64, tpu.core_type = #tpu.core_type<tc>, window_params = [{transform_indices = @transform_0, window_bounds = array<i64: 1, 12, 16>}, {pipeline_mode = #tpu.pipeline_mode<synchronous>, transform_indices = @transform_1, window_bounds = array<i64: 96, 112>}, {transform_indices = @transform_2, window_bounds = array<i64: 1, 96, 16>}]} {
    %0 = tpu.iota {dimensions = array<i32: 0>} : vector<4x16xi32>
    %c0_i32 = arith.constant 0 : i32
    %1 = vector.broadcast %c0_i32 : i32 to vector<4x16xi32>
    %2 = arith.cmpi eq, %0, %1 : vector<4x16xi32>
    %3 = arith.extui %2 : vector<4x16xi1> to vector<4x16xi32>
    %4 = arith.sitofp %3 : vector<4x16xi32> to vector<4x16xf32>
    %cst = arith.constant 0.000000e+00 : f32
    %5 = vector.broadcast %cst : f32 to vector<4x16xf32>
    %c12 = arith.constant 12 : index
    %c0 = arith.constant 0 : index
    %6 = vector.load %arg4[%c12, %c0] : memref<112x16xf32, #tpu.memory_space<vmem>>, vector<4x16xf32>
    tpu.vector_store %arg4[%c12, %c0], %4 {strides = array<i32>} : memref<112x16xf32, #tpu.memory_space<vmem>>, vector<4x16xf32>,
    %c28 = arith.constant 28 : index
    %c0_0 = arith.constant 0 : index
    %7 = vector.load %arg4[%c28, %c0_0] : memref<112x16xf32, #tpu.memory_space<vmem>>, vector<4x16xf32>
    tpu.vector_store %arg4[%c28, %c0_0], %5 {strides = array<i32>} : memref<112x16xf32, #tpu.memory_space<vmem>>, vector<4x16xf32>,
    %c44 = arith.constant 44 : index
    %c0_1 = arith.constant 0 : index
    %8 = vector.load %arg4[%c44, %c0_1] : memref<112x16xf32, #tpu.memory_space<vmem>>, vector<4x16xf32>
    tpu.vector_store %arg4[%c44, %c0_1], %5 {strides = array<i32>} : memref<112x16xf32, #tpu.memory_space<vmem>>, vector<4x16xf32>,
    %c60 = arith.constant 60 : index
    %c0_2 = arith.constant 0 : index
    %9 = vector.load %arg4[%c60, %c0_2] : memref<112x16xf32, #tpu.memory_space<vmem>>, vector<4x16xf32>
    tpu.vector_store %arg4[%c60, %c0_2], %5 {strides = array<i32>} : memref<112x16xf32, #tpu.memory_space<vmem>>, vector<4x16xf32>,
    %c76 = arith.constant 76 : index
    %c0_3 = arith.constant 0 : index
    %10 = vector.load %arg4[%c76, %c0_3] : memref<112x16xf32, #tpu.memory_space<vmem>>, vector<4x16xf32>
    tpu.vector_store %arg4[%c76, %c0_3], %5 {strides = array<i32>} : memref<112x16xf32, #tpu.memory_space<vmem>>, vector<4x16xf32>,
    %c92 = arith.constant 92 : index
    %c0_4 = arith.constant 0 : index
    %11 = vector.load %arg4[%c92, %c0_4] : memref<112x16xf32, #tpu.memory_space<vmem>>, vector<4x16xf32>
    tpu.vector_store %arg4[%c92, %c0_4], %5 {strides = array<i32>} : memref<112x16xf32, #tpu.memory_space<vmem>>, vector<4x16xf32>,
    %c108 = arith.constant 108 : index
    %c0_5 = arith.constant 0 : index
    %12 = vector.load %arg4[%c108, %c0_5] : memref<112x16xf32, #tpu.memory_space<vmem>>, vector<4x16xf32>
    tpu.vector_store %arg4[%c108, %c0_5], %5 {strides = array<i32>} : memref<112x16xf32, #tpu.memory_space<vmem>>, vector<4x16xf32>,
    %c0_6 = arith.constant 0 : index
    %c0_7 = arith.constant 0 : index
    %c0_8 = arith.constant 0 : index
    %13 = vector.load %arg1[%c0_6, %c0_7, %c0_8] : memref<1x12x16xf32, #tpu.memory_space<vmem>>, vector<1x12x16xf32>
    %14 = vector.shape_cast %13 : vector<1x12x16xf32> to vector<12x16xf32>
    %cst_9 = arith.constant 0.000000e+00 : f32
    %15 = vector.broadcast %cst_9 : f32 to vector<12x3xf32>
    %c0_10 = arith.constant 0 : index
    %c0_11 = arith.constant 0 : index
    %16 = vector.load %arg4[%c0_10, %c0_11] : memref<112x16xf32, #tpu.memory_space<vmem>>, vector<12x3xf32>
    tpu.vector_store %arg4[%c0_10, %c0_11], %15 {strides = array<i32>} : memref<112x16xf32, #tpu.memory_space<vmem>>, vector<12x3xf32>,
    %17 = vector.extract_strided_slice %14 {offsets = [0, 0], sizes = [12, 13], strides = [1, 1]} : vector<12x16xf32> to vector<12x13xf32>
    %c0_12 = arith.constant 0 : index
    %c3 = arith.constant 3 : index
    %18 = vector.load %arg4[%c0_12, %c3] : memref<112x16xf32, #tpu.memory_space<vmem>>, vector<12x13xf32>
    tpu.vector_store %arg4[%c0_12, %c3], %17 {strides = array<i32>} : memref<112x16xf32, #tpu.memory_space<vmem>>, vector<12x13xf32>,
    %cst_13 = arith.constant 0.000000e+00 : f32
    %19 = vector.broadcast %cst_13 : f32 to vector<12x2xf32>
    %c16 = arith.constant 16 : index
    %c0_14 = arith.constant 0 : index
    %20 = vector.load %arg4[%c16, %c0_14] : memref<112x16xf32, #tpu.memory_space<vmem>>, vector<12x2xf32>
    tpu.vector_store %arg4[%c16, %c0_14], %19 {strides = array<i32>} : memref<112x16xf32, #tpu.memory_space<vmem>>, vector<12x2xf32>,
    %21 = vector.extract_strided_slice %14 {offsets = [0, 0], sizes = [12, 14], strides = [1, 1]} : vector<12x16xf32> to vector<12x14xf32>
    %c16_15 = arith.constant 16 : index
    %c2 = arith.constant 2 : index
    %22 = vector.load %arg4[%c16_15, %c2] : memref<112x16xf32, #tpu.memory_space<vmem>>, vector<12x14xf32>
    tpu.vector_store %arg4[%c16_15, %c2], %21 {strides = array<i32>} : memref<112x16xf32, #tpu.memory_space<vmem>>, vector<12x14xf32>,
    %cst_16 = arith.constant 0.000000e+00 : f32
    %23 = vector.broadcast %cst_16 : f32 to vector<12x1xf32>
    %c32 = arith.constant 32 : index
    %c0_17 = arith.constant 0 : index
    %24 = vector.load %arg4[%c32, %c0_17] : memref<112x16xf32, #tpu.memory_space<vmem>>, vector<12x1xf32>
    tpu.vector_store %arg4[%c32, %c0_17], %23 {strides = array<i32>} : memref<112x16xf32, #tpu.memory_space<vmem>>, vector<12x1xf32>,
    %25 = vector.extract_strided_slice %14 {offsets = [0, 0], sizes = [12, 15], strides = [1, 1]} : vector<12x16xf32> to vector<12x15xf32>
    %c32_18 = arith.constant 32 : index
    %c1 = arith.constant 1 : index
    %26 = vector.load %arg4[%c32_18, %c1] : memref<112x16xf32, #tpu.memory_space<vmem>>, vector<12x15xf32>
    tpu.vector_store %arg4[%c32_18, %c1], %25 {strides = array<i32>} : memref<112x16xf32, #tpu.memory_space<vmem>>, vector<12x15xf32>,
    %c48 = arith.constant 48 : index
    %c0_19 = arith.constant 0 : index
    %27 = vector.load %arg4[%c48, %c0_19] : memref<112x16xf32, #tpu.memory_space<vmem>>, vector<12x16xf32>
    tpu.vector_store %arg4[%c48, %c0_19], %14 {strides = array<i32>} : memref<112x16xf32, #tpu.memory_space<vmem>>, vector<12x16xf32>,
    %28 = vector.extract_strided_slice %14 {offsets = [0, 1], sizes = [12, 15], strides = [1, 1]} : vector<12x16xf32> to vector<12x15xf32>
    %c64 = arith.constant 64 : index
    %c0_20 = arith.constant 0 : index
    %29 = vector.load %arg4[%c64, %c0_20] : memref<112x16xf32, #tpu.memory_space<vmem>>, vector<12x15xf32>
    tpu.vector_store %arg4[%c64, %c0_20], %28 {strides = array<i32>} : memref<112x16xf32, #tpu.memory_space<vmem>>, vector<12x15xf32>,
    %cst_21 = arith.constant 0.000000e+00 : f32
    %30 = vector.broadcast %cst_21 : f32 to vector<12x1xf32>
    %c64_22 = arith.constant 64 : index
    %c15 = arith.constant 15 : index
    %31 = vector.load %arg4[%c64_22, %c15] : memref<112x16xf32, #tpu.memory_space<vmem>>, vector<12x1xf32>
    tpu.vector_store %arg4[%c64_22, %c15], %30 {strides = array<i32>} : memref<112x16xf32, #tpu.memory_space<vmem>>, vector<12x1xf32>,
    %32 = vector.extract_strided_slice %14 {offsets = [0, 2], sizes = [12, 14], strides = [1, 1]} : vector<12x16xf32> to vector<12x14xf32>
    %c80 = arith.constant 80 : index
    %c0_23 = arith.constant 0 : index
    %33 = vector.load %arg4[%c80, %c0_23] : memref<112x16xf32, #tpu.memory_space<vmem>>, vector<12x14xf32>
    tpu.vector_store %arg4[%c80, %c0_23], %32 {strides = array<i32>} : memref<112x16xf32, #tpu.memory_space<vmem>>, vector<12x14xf32>,
    %cst_24 = arith.constant 0.000000e+00 : f32
    %34 = vector.broadcast %cst_24 : f32 to vector<12x2xf32>
    %c80_25 = arith.constant 80 : index
    %c14 = arith.constant 14 : index
    %35 = vector.load %arg4[%c80_25, %c14] : memref<112x16xf32, #tpu.memory_space<vmem>>, vector<12x2xf32>
    tpu.vector_store %arg4[%c80_25, %c14], %34 {strides = array<i32>} : memref<112x16xf32, #tpu.memory_space<vmem>>, vector<12x2xf32>,
    %36 = vector.extract_strided_slice %14 {offsets = [0, 3], sizes = [12, 13], strides = [1, 1]} : vector<12x16xf32> to vector<12x13xf32>
    %c96 = arith.constant 96 : index
    %c0_26 = arith.constant 0 : index
    %37 = vector.load %arg4[%c96, %c0_26] : memref<112x16xf32, #tpu.memory_space<vmem>>, vector<12x13xf32>
    tpu.vector_store %arg4[%c96, %c0_26], %36 {strides = array<i32>} : memref<112x16xf32, #tpu.memory_space<vmem>>, vector<12x13xf32>,
    %cst_27 = arith.constant 0.000000e+00 : f32
    %38 = vector.broadcast %cst_27 : f32 to vector<12x3xf32>
    %c96_28 = arith.constant 96 : index
    %c13 = arith.constant 13 : index
    %39 = vector.load %arg4[%c96_28, %c13] : memref<112x16xf32, #tpu.memory_space<vmem>>, vector<12x3xf32>
    tpu.vector_store %arg4[%c96_28, %c13], %38 {strides = array<i32>} : memref<112x16xf32, #tpu.memory_space<vmem>>, vector<12x3xf32>,
    %c0_29 = arith.constant 0 : index
    %c0_30 = arith.constant 0 : index
    %40 = vector.load %arg2[%c0_29, %c0_30] : memref<96x112xf32, #tpu.memory_space<vmem>>, vector<96x112xf32>
    %c0_31 = arith.constant 0 : index
    %c0_32 = arith.constant 0 : index
    %41 = vector.load %arg4[%c0_31, %c0_32] : memref<112x16xf32, #tpu.memory_space<vmem>>, vector<112x16xf32>
    %cst_33 = arith.constant dense<0.000000e+00> : vector<96x16xf32>
    %42 = tpu.matmul %40, %41, %cst_33 {dimension_numbers = #tpu.dot_dimension_numbers<[1], [0], [0], [1], [0, 0, 1, 1], [], []>} : vector<96x112xf32>, vector<112x16xf32>, vector<96x16xf32> -> vector<96x16xf32>
    %cst_34 = arith.constant 0.000000e+00 : f32
    %43 = vector.broadcast %cst_34 : f32 to vector<96x16xf32>
    %44 = arith.maximumf %42, %43 : vector<96x16xf32>
    %c0_35 = arith.constant 0 : index
    %c0_36 = arith.constant 0 : index
    %c0_37 = arith.constant 0 : index
    %45 = vector.load %arg3[%c0_35, %c0_36, %c0_37] : memref<1x96x16xf32, #tpu.memory_space<vmem>>, vector<1x96x16xf32>
    %46 = vector.shape_cast %45 : vector<1x96x16xf32> to vector<96x16xf32>
    %47 = vector.shape_cast %44 : vector<96x16xf32> to vector<1x96x16xf32>
    tpu.vector_store %arg3[%c0_35, %c0_36, %c0_37], %47 {strides = array<i32>} : memref<1x96x16xf32, #tpu.memory_space<vmem>>, vector<1x96x16xf32>,
    return
  }
  func.func @transform_0(%arg0: i32) -> (i32, i32, i32) {
    %c0_i32 = arith.constant 0 : i32
    %c0_i32_0 = arith.constant 0 : i32
    %c0_i32_1 = arith.constant 0 : i32
    return %arg0, %c0_i32, %c0_i32_0 : i32, i32, i32
  }
  func.func @transform_1(%arg0: i32) -> (i32, i32) {
    %c0_i32 = arith.constant 0 : i32
    %c0_i32_0 = arith.constant 0 : i32
    %c0_i32_1 = arith.constant 0 : i32
    return %c0_i32, %c0_i32_0 : i32, i32
  }
  func.func @transform_2(%arg0: i32) -> (i32, i32, i32) {
    %c0_i32 = arith.constant 0 : i32
    %c0_i32_0 = arith.constant 0 : i32
    %c0_i32_1 = arith.constant 0 : i32
    return %arg0, %c0_i32, %c0_i32_0 : i32, i32, i32
  }
}

</mosaic_0001>

<bundles_post_ra>
// kernel: inception_forward.1
= control target key start
LH: loop header
LB: loop body
LE: loop exit
PB: predicated region body
PF: predicated region fallthrough
CT: control target
= control target key end

     0   :  { %7 = vsyncpa [#allocation4], 0  ;;  %s1235_s0 = inlined_call_operand.hbm [shape: f32[2,12,16], index: 0, kind: input, shape index: {}]   ;;  %s1236_s1 = inlined_call_operand.hbm [shape: f32[96,112], index: 1, kind: input, shape index: {}]   ;;  %s1237_s2 = inlined_call_operand.hbm [shape: f32[2,96,16], index: 2, kind: output, shape index: {}]  }
   0x1   :  { %9 = vsyncpa [#allocation4 + $0x1], 0 }
   0x2   :  { %10 = vsyncpa [#allocation7], 0 }
   0x3   :  { %11 = vsyncpa [#allocation5], 0 }
   0x4   :  { %13 = vsyncpa [#allocation5 + $0x1], 0  ;;  %s960_s9 = smov 0   ;;  %s962_s10 = smov 0  }
   0x5   :  { %s964_s11 = smov 0   ;;  %s966_s12 = smov 0  }
   0x6 LB: > { %s981_s13 = sadd.s32 4294967295, %s929_s12   ;;  %s590_s14 = sadd.s32 4294967294, %s929_s12   ;;  %s929_s12 = sphi %s966_s12, %s1257_s12   ;;  %s925_s11 = sphi %s964_s11, %s1256_s11   ;;  %s921_s10 = sphi %s962_s10, %s1255_s10   ;;  %s917_s9 = sphi %s960_s9, %s1254_s9  }
   0x7   : > { %p39_p0 = scmp.ne.s32.totalorder %s921_s10, %s917_s9  ;;  %p1238_p1 = scmp.eq.s32.totalorder %s981_s13, 0 }
   0x8   : > { %p90_p3 = scmp.eq.s32.totalorder %s590_s14, 1  ;;  %p591_p5 = scmp.ge.s32.totalorder %s929_s12, 1 }
   0x9   : > { %p990_p4 = por %p1238_p1, %p39_p0  ;;  %p97_p7 = scmp.lt.s32.totalorder %s929_s12, 3 }
   0xa   : > { %p995_p6 = por %p90_p3, %p39_p0  ;;  %s931_s18 = smov [#allocation6]  }
   0xb   : > { %s1241_s15 = scalar_select %p990_p4, 1, 0 }
   0xc   : > { %s1242_s16 = scalar_select %p995_p6, 1, 0 }
   0xd   : > { %p1000_p8 = pnand %p591_p5, %p97_p7  ;;  %s109_s19 = sshll.u32 %s931_s18, 4  ;;  %s1004_s19 = int_to_ptr.vmem [resolvable:$true] %s109_s19 }
   0xe   : > { %s1016_s21 = sadd.s32 1, %s929_s12   ;;  %s26_s22 = sadd.s32 1, %s925_s11 }
   0xf   : > { %s1243_s17 = scalar_select %p1000_p8, 1, 0 }
  0x10   : > { %p741_p9 = pneg %p1000_p8  ;;  %s23_s23 = ssub.s32 %s929_s12, %s1016_s21 }
  0x11   : > { %s801_s26 = scalar_lea.hbm %s1236_s1, 1536 }
  0x12   : > { %p1011_p11 = pnand %p741_p9, %p1238_p1  ;;  %p802_p12 = scmp.ne.s32.totalorder %s1236_s1, %s801_s26 }
  0x13   : > { %p808_p5 = scmp.lt.u32.totalorder %s801_s26, %s1236_s1 }
  0x14   : > { %p803_p13 = pneg %p1011_p11 }
  0x16   : > { %p804_p0 = pnand %p803_p13, %p802_p12 }
  0x18   : > { %p805_p3 = pneg %p804_p0 }
  0x1a   : > { %p810_p7 = pnand %p808_p5, %p805_p3 }
  0x1c   : > { %813 = shalt.err (!%p810_p7)
}
  0x1d   : > { %s814_s3 = scalar_lea.vmem %s1004_s19, 1536  ;;  %p822_p2 = scmp.lt.s32.totalorder %s1004_s19, %s1004_s19 }
  0x1e   : > { %p815_p9 = scmp.ne.s32.totalorder %s1004_s19, %s814_s3  ;;  %p823_p6 = scmp.lt.s32.totalorder %s814_s3, %s814_s3 }
  0x20   : > { %p817_p10 = pnand %p815_p9, %p803_p13  ;;  %p824_p4 = por %p823_p6, %p822_p2 }
  0x22   : > { %p818_p1 = pneg %p817_p10 }
  0x24   : > { %p825_p8 = pnand %p824_p4, %p818_p1 }
  0x26   : > { %828 = shalt.err (!%p825_p8)
}
  0x27   : > { %s932_s4 = smov 128   ;;  %s933_s5 = smov 8  }
  0x28   : > { %744 = dma.hbm_to_vmem [thread:$0]  (!%p1011_p11), %s1236_s1, 1536, %s1004_s19, [#allocation7], %s932_s4, %s932_s4, %s933_s5  }
  0x29   : > { %p24_p1 = scmp.eq.s32.totalorder %s23_s23, 0  ;;  %p33_p2 = scmp.ne.s32.totalorder %s925_s11, %s921_s10 }
  0x2a   : > { %p34_p4 = scmp.eq.s32.totalorder %s929_s12, 0  ;;  %p754_p6 = scmp.lt.s32.totalorder %s929_s12, 2 }
  0x2b   : > { %s1050_s8 = scalar_select %p24_p1, %s925_s11, %s26_s22  }
  0x2c   : > { %p35_p8 = por %p34_p4, %p33_p2  ;;  %p1245_p10 = scmp.eq.s32.totalorder %s981_s13, 1 }
  0x2d   : > { %s123_s18 = sand.u32 1, %s925_s11   ;;  %s616_s20 = sshll.u32 %s929_s12, 8 }
  0x2e   : > { %p1054_p12 = por %p1245_p10, %p33_p2  ;;  %s594_s24 = sshll.u32 %s123_s18, 4 }
  0x2f   : > { %s1063_s27 = scalar_lea.hbm %s1235_s0, %s616_s20  ;;  %s127_s19 = scalar_lea.vmem [#allocation3], %s594_s24 }
  0x30   : > { %s134_s22 = sshll.u32 %s127_s19, 4  ;;  %p1065_p11 = pnand %p754_p6, %p35_p8  ;;  %s1069_s22 = int_to_ptr.vmem [resolvable:$true] %s134_s22 }
  0x31   : > { %s1071_s28 = scalar_lea.sflag [#allocation4], %s123_s18  ;;  %s829_s29 = scalar_lea.hbm %s1063_s27, 256 }
  0x32   : > { %p830_p13 = scmp.ne.s32.totalorder %s1063_s27, %s829_s29  ;;  %p831_p0 = pneg %p1065_p11 }
  0x33   : > { %s834_s6 = scalar_lea.hbm %s1235_s0, 512  ;;  %p835_p7 = scmp.lt.u32.totalorder %s1063_s27, %s1235_s0 }
  0x34   : > { %p832_p3 = pnand %p831_p0, %p830_p13  ;;  %p836_p9 = scmp.lt.u32.totalorder %s834_s6, %s829_s29 }
  0x35   : > { %p838_p2 = scmp.lt.u32.totalorder %s829_s29, %s1063_s27 }
  0x36   : > { %p833_p5 = pneg %p832_p3  ;;  %p837_p1 = por %p836_p9, %p835_p7 }
  0x38   : > { %p839_p4 = por %p838_p2, %p837_p1 }
  0x3a   : > { %p840_p6 = pnand %p839_p4, %p833_p5 }
  0x3c   : > { %843 = shalt.err (!%p840_p6)
}
  0x3d   : > { %s844_s18 = scalar_lea.vmem %s1069_s22, 256  ;;  %s934_s24 = smov [#allocation3]  }
  0x3e   : > { %p845_p8 = scmp.ne.s32.totalorder %s1069_s22, %s844_s18  ;;  %s849_s25 = sshll.u32 %s934_s24, 4  ;;  %s850_s25 = int_to_ptr.vmem [resolvable:$false] %s849_s25 }
  0x3f   : > { %s851_s26 = scalar_lea.vmem %s850_s25, 512  ;;  %p852_p3 = scmp.lt.s32.totalorder %s1069_s22, %s850_s25 }
  0x40   : > { %p847_p10 = pnand %p845_p8, %p831_p0  ;;  %p853_p7 = scmp.lt.s32.totalorder %s851_s26, %s844_s18 }
  0x42   : > { %p848_p13 = pneg %p847_p10  ;;  %p854_p9 = por %p853_p7, %p852_p3 }
  0x44   : > { %p855_p1 = pnand %p854_p9, %p848_p13 }
  0x46   : > { %858 = shalt.err (!%p855_p1)
}
  0x47   : > { %748 = dma.hbm_to_vmem [thread:$0]  (!%p1065_p11), %s1063_s27, 256, %s1069_s22, %s1071_s28, %s932_s4, %s932_s4, %s933_s5  }
  0x48   : > { %p1248_p0 = scmp.ne.s32.totalorder %s1243_s17, 0 }
  0x49   : > { %s1105_s19 = sand.u32 (!%p1248_p0), 1, %s921_s10   ;;  %p1249_p5 = scmp.ne.s32.totalorder (!%p1248_p0), %s1241_s15, 0 }
  0x4a   : > { %146 = sbr.rel (%p1248_p0) target bundleno = 484 (0x1e4), region = 28  ;;  %s598_s29 = sshll.u32 (!%p1248_p0), %s1105_s19, 4 }
  0x4b   : > { %s149_s30 = scalar_lea.sflag (!%p1248_p0), [#allocation4], %s1105_s19  ;;  %s152_s3 = scalar_lea.vmem (!%p1248_p0), [#allocation3], %s598_s29 }
  0x51   : > { %904 = dma.done.wait (%p1249_p5), %s149_s30, 256  }
  0x52   : > { %906 = vsyncadd (%p1249_p5), %s149_s30, 4294967040  ;;  %p1250_p2 = scmp.eq.s32.totalorder %s981_s13, 0 }
  0x54   : > { %908 = dma.done.wait (%p1250_p2), [#allocation7], 1536   ;;  %p1251_p11 = pmov %p1250_p2 }
  0x55   : > { %vm182_vm0 = vcmask 125952   ;;  %v177_v0 = vlaneseq  ;;  %vm208_vm1 = vcmask 15360   ;;  %vm192_vm2 = vcmask 23552   ;;  %v190_v3 = vld [vmem:[%s152_s3] sm:$0xff]  ;;  %v191_v4 = vld [vmem:[%s152_s3 + $0x8] sm:$0xf] }
  0x56   : > { %910 = vsyncadd (%p1251_p11), [#allocation7], 4294965760  ;;  %v935_v1 = vmov 0.0   ;;  %vm210_vm3 = vcmask 11264   ;;  %vm194_vm4 = vcmask 19456   ;;  %vm224_vm5 = vcmask 3072  }
  0x57   : > { %209 = vst.msk [vmem:[#allocation2 + $0x10] sm:$0xff] %vm208_vm1, %v935_v1  ;;  %vm222_vm6 = vcmask 7168   ;;  %v178_v2 = vshrl.u32 %v177_v0, 7  ;;  %vm236_vm7 = vcmask 130048   ;;  %s936_s15 = smov 2   ;;  %s937_s17 = smov 3  }
  0x58   : > { %184 = vst.msk [vmem:[#allocation2 + $0x1c] sm:$0xf] %vm182_vm0, %v935_v1  ;;  %185 = vst.msk [vmem:[#allocation2 + $0x2c] sm:$0xf] %vm182_vm0, %v935_v1  ;;  %212 = vrot.lane.b32.xlu1 %v190_v3, %s936_s15  ;;  %198 = vrot.lane.b32.xlu0 %v190_v3, %s937_s17  ;;  %s938_s4 = smov 1   ;;  %s939_s5 = smov 127  }
  0x59   : > { %186 = vst.msk [vmem:[#allocation2 + $0x3c] sm:$0xf] %vm182_vm0, %v935_v1  ;;  %187 = vst.msk [vmem:[#allocation2 + $0x4c] sm:$0xf] %vm182_vm0, %v935_v1  ;;  %vm179_vm8 = vcmp.eq.s32.totalorder %v178_v2, 0  ;;  %s940_s27 = smov 126  }
  0x5a   : > { %188 = vst.msk [vmem:[#allocation2 + $0x5c] sm:$0xf] %vm182_vm0, %v935_v1  ;;  %189 = vst.msk [vmem:[#allocation2 + $0x6c] sm:$0xf] %vm182_vm0, %v935_v1  ;;  %v600_v5 = vsel %vm179_vm8, 1.0, %v935_v1  ;;  %s941_s22 = smov 125  }
  0x5b   : > { %193 = vst.msk [vmem:[#allocation2] sm:$0xff] %vm192_vm2, %v935_v1  ;;  %v281_v6 = vld [vmem:[#allocation6] sm:$0xff]  ;;  %vm307_vm9 = vcmask 916480   ;;  %v287_v7 = vld [vmem:[#allocation6 + $0x30] sm:$0xff]  ;;  %vm218_vm10 = vcmask 130064   ;;  %vm204_vm11 = vcmask 130072  }
  0x5c   : > { %211 = vst.msk [vmem:[#allocation2 + $0x18] sm:$0xf] %vm210_vm3, %v935_v1  ;;  %214 = vrot.lane.b32.xlu1 %v191_v4, %s936_s15  ;;  %200 = vrot.lane.b32.xlu0 %v191_v4, %s937_s17  ;;  %vm220_vm12 = vcmask 125968   ;;  %vm206_vm13 = vcmask 125976   ;;  %vm234_vm14 = vcmask 125960   ;;  %vm232_vm15 = vcmask 130056  }
  0x5d   : > { %195 = vst.msk [vmem:[#allocation2 + $0x8] sm:$0xf] %vm194_vm4, %v935_v1  ;;  %671 = vmatprep.mubr.msk.f32.mxu0 %vm307_vm9, %v281_v6  ;;  %680 = vmatprep.mubr.msk.f32.mxu1 %vm307_vm9, %v287_v7  ;;  %vm245_vm1 = vcmask 121856   ;;  %vm251_vm2 = vcmask 126072   ;;  %vm249_vm3 = vcmask 130168   ;;  %vm261_vm4 = vcmask 109568  }
  0x5e   : > { %225 = vst.msk [vmem:[#allocation2 + $0x28] sm:$0xf] %vm224_vm5, %v935_v1  ;;  %vm259_vm5 = vcmask 113664   ;;  %vm263_vm8 = vcmask 130160   ;;  %v282_v41 = vld [vmem:[#allocation6 + $0x8] sm:$0xff]  ;;  %v288_v42 = vld [vmem:[#allocation6 + $0x38] sm:$0xff] }
  0x5f   : > { %223 = vst.msk [vmem:[#allocation2 + $0x20] sm:$0xff] %vm222_vm6, %v935_v1  ;;  %vm265_vm6 = vcmask 126064   ;;  %v283_v43 = vld [vmem:[#allocation6 + $0x10] sm:$0xff]  ;;  %v289_v44 = vld [vmem:[#allocation6 + $0x40] sm:$0xff]  ;;  %v284_v45 = vld [vmem:[#allocation6 + $0x18] sm:$0xff]  ;;  %s731_s23 = smul.u32 96, %s1105_s19 }
  0x60   : > { %237 = vst.msk [vmem:[#allocation2 + $0x30] sm:$0xff] %vm236_vm7, %v190_v3  ;;  %228 = vrot.lane.b32.xlu1 %v191_v4, %s938_s4  ;;  %226 = vrot.lane.b32.xlu0 %v190_v3, %s938_s4  ;;  %v290_v46 = vld [vmem:[#allocation6 + $0x48] sm:$0xff]  ;;  %v285_v47 = vld [vmem:[#allocation6 + $0x20] sm:$0xff]  ;;  %v291_v48 = vld [vmem:[#allocation6 + $0x50] sm:$0xff]  ;;  %s732_s6 = smul.u32 1536, %s981_s13  ;;  %s494_s24 = scalar_lea.sflag [#allocation5], %s1105_s19 }
  0x61   : > { %238 = vst.msk [vmem:[#allocation2 + $0x38] sm:$0xf] %vm182_vm0, %v191_v4  ;;  %183 = vst.msk [vmem:[#allocation2 + $0xc] sm:$0xf] %vm182_vm0, %v600_v5  ;;  %vm247_vm0 = vcmask 117760   ;;  %v286_v49 = vld [vmem:[#allocation6 + $0x28] sm:$0xff] }
  0x62   : > { %v292_v50 = vld [vmem:[#allocation6 + $0x58] sm:$0xff]  ;;  %s1158_s28 = scalar_lea.vmem [#allocation8], %s731_s23  ;;  %s1181_s18 = scalar_lea.hbm %s1237_s2, %s732_s6 }
  0x63   : > { %s507_s7 = sshll.u32 %s1158_s28, 4  ;;  %s942_s26 = smov [#allocation8]   ;;  %s1183_s7 = int_to_ptr.vmem [resolvable:$true] %s507_s7 }
  0x64   : > { %241 = vrot.lane.b32.xlu1 %v191_v4, %s939_s5  ;;  %239 = vrot.lane.b32.xlu0 %v190_v3, %s939_s5  ;;  %s859_s25 = scalar_lea.vmem %s1183_s7, 1536  ;;  %s863_s29 = sshll.u32 %s942_s26, 4  ;;  %s864_s29 = int_to_ptr.vmem [resolvable:$false] %s863_s29 }
  0x65   : > { %p860_p4 = scmp.ne.s32.totalorder %s1183_s7, %s859_s25  ;;  %s865_s30 = scalar_lea.vmem %s864_s29, 3072 }
  0x66   : > { %p866_p10 = scmp.lt.s32.totalorder %s1183_s7, %s864_s29  ;;  %p867_p13 = scmp.lt.s32.totalorder %s865_s30, %s859_s25 }
  0x67   : > { %v299_v27 = vld [vmem:[#allocation2 + $0x30] sm:$0xff]  ;;  %p861_p6 = pnand %p860_p4, %p1054_p12 }
  0x68   : > { %255 = vrot.lane.b32.xlu1 %v191_v4, %s940_s27  ;;  %253 = vrot.lane.b32.xlu0 %v190_v3, %s940_s27  ;;  %v300_v28 = vld [vmem:[#allocation2 + $0x38] sm:$0xff]  ;;  %p868_p3 = por %p867_p13, %p866_p10 }
  0x69   : > { %v701_v31 = vpack.c.bf16 %v300_v28, %v299_v27  ;;  %p862_p8 = pneg %p861_p6 }
  0x6b   : > { %p869_p7 = pnand %p868_p3, %p862_p8 }
  0x6c   : > { %269 = vrot.lane.b32.xlu1 %v191_v4, %s941_s22  ;;  %267 = vrot.lane.b32.xlu0 %v190_v3, %s941_s22 }
  0xca   : > { %v213_v8 = vpop.permute.xlu1 %212  ;;  %v199_v9 = vpop.permute.xlu0 %198 }
  0xcb   : > { %219 = vst.msk [vmem:[#allocation2 + $0x10] sm:$0xff] %vm218_vm10, %v213_v8  ;;  %vm275_vm10 = vcmask 101376  }
  0xcc   : > { %205 = vst.msk [vmem:[#allocation2] sm:$0xff] %vm204_vm11, %v199_v9  ;;  %vm273_vm11 = vcmask 105472  }
  0xce   : > { %v215_v10 = vpop.permute.xlu1 %214  ;;  %v201_v11 = vpop.permute.xlu0 %200 }
  0xcf   : > { %221 = vst.msk [vmem:[#allocation2 + $0x18] sm:$0xf] %vm220_vm12, %v215_v10  ;;  %vm279_vm12 = vcmask 126056  }
  0xd0   : > { %207 = vst.msk [vmem:[#allocation2 + $0x8] sm:$0xf] %vm206_vm13, %v201_v11  ;;  %vm277_vm13 = vcmask 130152  }
  0xd2   : > { %v229_v12 = vpop.permute.xlu1 %228  ;;  %v227_v13 = vpop.permute.xlu0 %226  ;;  %v295_v16 = vld [vmem:[#allocation2 + $0x10] sm:$0xff] }
  0xd3   : > { %235 = vst.msk [vmem:[#allocation2 + $0x28] sm:$0xf] %vm234_vm14, %v229_v12  ;;  %v293_v14 = vld [vmem:[#allocation2] sm:$0xff] }
  0xd4   : > { %233 = vst.msk [vmem:[#allocation2 + $0x20] sm:$0xff] %vm232_vm15, %v227_v13 }
  0xd6   : > { %v296_v17 = vld [vmem:[#allocation2 + $0x18] sm:$0xff]  ;;  %v242_v18 = vpop.permute.xlu1 %241  ;;  %v240_v19 = vpop.permute.xlu0 %239 }
  0xd7   : > { %v294_v15 = vld [vmem:[#allocation2 + $0x8] sm:$0xff]  ;;  %248 = vst.msk [vmem:[#allocation2 + $0x48] sm:$0xf] %vm247_vm0, %v242_v18  ;;  %v693_v21 = vpack.c.bf16 %v296_v17, %v295_v16 }
  0xd8   : > { %v689_v20 = vpack.c.bf16 %v294_v15, %v293_v14  ;;  %246 = vst.msk [vmem:[#allocation2 + $0x40] sm:$0xff] %vm245_vm1, %v240_v19 }
  0xd9   : > { %252 = vst.msk [vmem:[#allocation2 + $0x48] sm:$0xf] %vm251_vm2, %v935_v1 }
  0xda   : > { %250 = vst.msk [vmem:[#allocation2 + $0x40] sm:$0xff] %vm249_vm3, %v935_v1  ;;  %690 = vmatprep.subr.bf16.mxu0 %v689_v20  ;;  %717 = vmatprep.subr.bf16.mxu1 %v689_v20  ;;  %v256_v22 = vpop.permute.xlu1 %255  ;;  %v254_v23 = vpop.permute.xlu0 %253  ;;  %v298_v25 = vld [vmem:[#allocation2 + $0x28] sm:$0xff] }
  0xdb   : > { %692 = vmatpush3.bf16.msra.mxu0 %v689_v20  ;;  %724 = vmatpush3.bf16.msra.mxu1 %v689_v20  ;;  %v297_v24 = vld [vmem:[#allocation2 + $0x20] sm:$0xff]  ;;  %262 = vst.msk [vmem:[#allocation2 + $0x58] sm:$0xf] %vm261_vm4, %v256_v22 }
  0xdc   : > { %694 = vmatprep.subr.bf16.mxu0 %v693_v21  ;;  %718 = vmatprep.subr.bf16.mxu1 %v693_v21  ;;  %260 = vst.msk [vmem:[#allocation2 + $0x50] sm:$0xff] %vm259_vm5, %v254_v23  ;;  %v697_v26 = vpack.c.bf16 %v298_v25, %v297_v24 }
  0xdd   : > { %266 = vst.msk [vmem:[#allocation2 + $0x58] sm:$0xf] %vm265_vm6, %v935_v1 }
  0xde   : > { %264 = vst.msk [vmem:[#allocation2 + $0x50] sm:$0xff] %vm263_vm8, %v935_v1  ;;  %v270_v29 = vpop.permute.xlu1 %269  ;;  %v268_v30 = vpop.permute.xlu0 %267 }
  0xdf   : > { %696 = vmatpush3.bf16.msra.mxu0 %v693_v21  ;;  %725 = vmatpush3.bf16.msra.mxu1 %v693_v21  ;;  %276 = vst.msk [vmem:[#allocation2 + $0x68] sm:$0xf] %vm275_vm10, %v270_v29 }
  0xe0   : > { %698 = vmatprep.subr.bf16.mxu0 %v697_v26  ;;  %719 = vmatprep.subr.bf16.mxu1 %v697_v26  ;;  %274 = vst.msk [vmem:[#allocation2 + $0x60] sm:$0xff] %vm273_vm11, %v268_v30  ;;  %v302_v33 = vld [vmem:[#allocation2 + $0x48] sm:$0xff] }
  0xe1   : > { %280 = vst.msk [vmem:[#allocation2 + $0x68] sm:$0xf] %vm279_vm12, %v935_v1  ;;  %v301_v32 = vld [vmem:[#allocation2 + $0x40] sm:$0xff] }
  0xe2   : > { %278 = vst.msk [vmem:[#allocation2 + $0x60] sm:$0xff] %vm277_vm13, %v935_v1  ;;  %v705_v34 = vpack.c.bf16 %v302_v33, %v301_v32 }
  0xe3   : > { %700 = vmatpush3.bf16.msra.mxu0 %v697_v26  ;;  %726 = vmatpush3.bf16.msra.mxu1 %v697_v26 }
  0xe4   : > { %702 = vmatprep.subr.bf16.mxu0 %v701_v31  ;;  %720 = vmatprep.subr.bf16.mxu1 %v701_v31  ;;  %v304_v36 = vld [vmem:[#allocation2 + $0x58] sm:$0xff] }
  0xe5   : > { %v303_v35 = vld [vmem:[#allocation2 + $0x50] sm:$0xff] }
  0xe6   : > { %v709_v37 = vpack.c.bf16 %v304_v36, %v303_v35 }
  0xe7   : > { %704 = vmatpush3.bf16.msra.mxu0 %v701_v31  ;;  %727 = vmatpush3.bf16.msra.mxu1 %v701_v31 }
  0xe8   : > { %706 = vmatprep.subr.bf16.mxu0 %v705_v34  ;;  %721 = vmatprep.subr.bf16.mxu1 %v705_v34  ;;  %v306_v39 = vld [vmem:[#allocation2 + $0x68] sm:$0xff] }
  0xe9   : > { %v305_v38 = vld [vmem:[#allocation2 + $0x60] sm:$0xff] }
  0xea   : > { %v713_v40 = vpack.c.bf16 %v306_v39, %v305_v38 }
  0xeb   : > { %708 = vmatpush3.bf16.msra.mxu0 %v705_v34  ;;  %728 = vmatpush3.bf16.msra.mxu1 %v705_v34 }
  0xec   : > { %710 = vmatprep.subr.bf16.mxu0 %v709_v37  ;;  %722 = vmatprep.subr.bf16.mxu1 %v709_v37 }
  0xef   : > { %712 = vmatpush3.bf16.msra.mxu0 %v709_v37  ;;  %729 = vmatpush3.bf16.msra.mxu1 %v709_v37 }
  0xf0   : > { %714 = vmatprep.subr.bf16.mxu0 %v713_v40  ;;  %723 = vmatprep.subr.bf16.mxu1 %v713_v40 }
  0xf3   : > { %716 = vmatpush3.bf16.msra.mxu0 %v713_v40  ;;  %730 = vmatpush3.bf16.msra.mxu1 %v713_v40 }
  0xf6   : > { %672 = vmatmul.mubr.msk.f32.vlgmr.msra.gmra.mrb[0].mxu0 %vm307_vm9, %v282_v41  ;;  %681 = vmatmul.mubr.msk.f32.vlgmr.msra.gmra.mrb[0].mxu1 %vm307_vm9, %v288_v42 }
  0xf7   : > { %674 = vmatprep.mubr.msk.f32.mxu0 %vm307_vm9, %v283_v43  ;;  %683 = vmatprep.mubr.msk.f32.mxu1 %vm307_vm9, %v289_v44 }
  0xfa   : > { %675 = vmatmul.mubr.msk.f32.gmra.mrb[2].mxu0 %vm307_vm9, %v284_v45  ;;  %684 = vmatmul.mubr.msk.f32.gmra.mrb[2].mxu1 %vm307_vm9, %v290_v46 }
  0xfb   : > { %677 = vmatprep.mubr.msk.f32.mxu0 %vm307_vm9, %v285_v47  ;;  %686 = vmatprep.mubr.msk.f32.mxu1 %vm307_vm9, %v291_v48 }
  0xfe   : > { %678 = vmatmul.mubr.msk.f32.gmra.mrb[4].mxu0 %vm307_vm9, %v286_v49  ;;  %687 = vmatmul.mubr.msk.f32.gmra.mrb[4].mxu1 %vm307_vm9, %v292_v50 }
 0x1c9   : > { %v673_v51 = vpop.f32.mrb[0].mxu0  ;;  %v682_v52 = vpop.f32.mrb[0].mxu1 }
 0x1ca   : > { %v470_v53 = vmax.f32 %v673_v51, 0.0  ;;  %v476_v54 = vmax.f32 %v682_v52, 0.0  ;;  %v410_v55 = vpop.f32.mrb[1].mxu0  ;;  %v440_v56 = vpop.f32.mrb[1].mxu1 }
 0x1cb   : > { %v469_v57 = vmax.f32 %v410_v55, 0.0  ;;  %v475_v58 = vmax.f32 %v440_v56, 0.0 }
 0x1cc   : > { %482 = vst.msk [vmem:[%s1158_s28 + $0x8] sm:$0xff] %vm236_vm7, %v470_v53  ;;  %488 = vst.msk [vmem:[%s1158_s28 + $0x38] sm:$0xff] %vm236_vm7, %v476_v54 }
 0x1cd   : > { %481 = vst.msk [vmem:[%s1158_s28] sm:$0xff] %vm236_vm7, %v469_v57  ;;  %487 = vst.msk [vmem:[%s1158_s28 + $0x30] sm:$0xff] %vm236_vm7, %v475_v58  ;;  %v676_v59 = vpop.f32.mrb[2].mxu0  ;;  %v685_v60 = vpop.f32.mrb[2].mxu1 }
 0x1ce   : > { %v472_v61 = vmax.f32 %v676_v59, 0.0  ;;  %v478_v62 = vmax.f32 %v685_v60, 0.0  ;;  %v420_v63 = vpop.f32.mrb[3].mxu0  ;;  %v450_v0 = vpop.f32.mrb[3].mxu1 }
 0x1cf   : > { %v471_v1 = vmax.f32 %v420_v63, 0.0  ;;  %v477_v2 = vmax.f32 %v450_v0, 0.0 }
 0x1d0   : > { %484 = vst.msk [vmem:[%s1158_s28 + $0x18] sm:$0xff] %vm236_vm7, %v472_v61  ;;  %490 = vst.msk [vmem:[%s1158_s28 + $0x48] sm:$0xff] %vm236_vm7, %v478_v62 }
 0x1d1   : > { %483 = vst.msk [vmem:[%s1158_s28 + $0x10] sm:$0xff] %vm236_vm7, %v471_v1  ;;  %489 = vst.msk [vmem:[%s1158_s28 + $0x40] sm:$0xff] %vm236_vm7, %v477_v2  ;;  %v679_v3 = vpop.f32.mrb[4].mxu0  ;;  %v688_v4 = vpop.f32.mrb[4].mxu1 }
 0x1d2   : > { %v474_v5 = vmax.f32 %v679_v3, 0.0  ;;  %v480_v6 = vmax.f32 %v688_v4, 0.0  ;;  %v430_v7 = vpop.f32.mrb[5].mxu0  ;;  %v460_v8 = vpop.f32.mrb[5].mxu1 }
 0x1d3   : > { %v473_v9 = vmax.f32 %v430_v7, 0.0  ;;  %v479_v10 = vmax.f32 %v460_v8, 0.0 }
 0x1d4   : > { %486 = vst.msk [vmem:[%s1158_s28 + $0x28] sm:$0xff] %vm236_vm7, %v474_v5  ;;  %492 = vst.msk [vmem:[%s1158_s28 + $0x58] sm:$0xff] %vm236_vm7, %v480_v6 }
 0x1d5   : > { %485 = vst.msk [vmem:[%s1158_s28 + $0x20] sm:$0xff] %vm236_vm7, %v473_v9  ;;  %491 = vst.msk [vmem:[%s1158_s28 + $0x50] sm:$0xff] %vm236_vm7, %v479_v10 }
 0x1d6   : > { %872 = shalt.err (!%p869_p7)
}
 0x1d7   : > { %s873_s3 = scalar_lea.hbm %s1181_s18, 1536  ;;  %s877_s4 = scalar_lea.hbm %s1237_s2, 3072 }
 0x1d8   : > { %p874_p9 = scmp.ne.s32.totalorder %s1181_s18, %s873_s3  ;;  %p878_p5 = scmp.lt.u32.totalorder %s1181_s18, %s1237_s2 }
 0x1d9   : > { %p879_p2 = scmp.lt.u32.totalorder %s877_s4, %s873_s3  ;;  %p881_p4 = scmp.lt.u32.totalorder %s873_s3, %s1181_s18 }
 0x1da   : > { %p875_p1 = pnand %p874_p9, %p1054_p12 }
 0x1db   : > { %p880_p11 = por %p879_p2, %p878_p5 }
 0x1dc   : > { %p876_p0 = pneg %p875_p1 }
 0x1dd   : > { %p882_p6 = por %p881_p4, %p880_p11 }
 0x1df   : > { %p883_p8 = pnand %p882_p6, %p876_p0 }
 0x1e1   : > { %886 = shalt.err (!%p883_p8)
}
 0x1e2   : > { %s943_s22 = smov 128   ;;  %s944_s23 = smov 8  }
 0x1e3   : > { %739 = dma.vmem_to_hbm [thread:$0]  (%p1054_p12), %s1183_s7, 1536, %s1181_s18, %s494_s24, %s943_s22, %s943_s22, %s944_s23  }
 0x1e4 PF: > { %s522_s28 = sand.u32 1, %s917_s9   ;;  %p1252_p10 = scmp.ne.s32.totalorder %s1242_s16, 0 }
 0x1e5   : > { %p1253_p13 = scmp.ge.s32.totalorder %s929_s12, 2  ;;  %s523_s6 = scalar_lea.sflag [#allocation5], %s522_s28 }
 0x1e7   : > { %p750_p3 = pnand %p1253_p13, %p1252_p10 }
 0x1e9   : > { %912 = dma.done.wait (!%p750_p3), %s523_s6, 1536  }
 0x1ea   : > { %914 = vsyncadd (!%p750_p3), %s523_s6, 4294965760  ;;  %p16_p7 = scmp.ge.s32.totalorder %s1016_s21, 4   ;;  %s1254_s9 = smov %s921_s10 }
 0x1eb   : > { %s1255_s10 = smov %s925_s11  ;;  %s1256_s11 = smov %s1050_s8 }
 0x1ec   : > { %s1257_s12 = smov %s1016_s21  ;;  %18 = sbr.rel (!%p16_p7) target bundleno = 6 (0x6), region = 77 }
 0x1f3   :  { %528 = vsyncpa [#allocation4], 1 }
 0x1f4   :  { %530 = vsyncpa [#allocation4 + $0x1], 1 }
 0x1f5   :  { %531 = vsyncpa [#allocation7], 1 }
 0x1f6   :  { %532 = vsyncpa [#allocation5], 1 }
 0x1f7   :  { %534 = vsyncpa [#allocation5 + $0x1], 1 }

</bundles_post_ra>
